<compile_context>
chip_gen: v7x
topology: tpu7x:2x2x1
jax: 0.10.0
libtpu: 0.0.40
codegen_flags: <defaults>
</compile_context>

<pallas_src>
import jax
import jax.numpy as jnp
from jax.experimental import pallas as pl
from jax.experimental.pallas import tpu as pltpu


def _copy_kernel(x_ref, o_ref):
    # Pure element copy of the current (rows_tile, W) block.
    o_ref[...] = x_ref[...]


def _resolve_shape(total, target_shape):
    """torch.reshape-style shape resolution (single -1, element-count check)."""
    tgt = [int(d) for d in target_shape]
    neg = [i for i, d in enumerate(tgt) if d == -1]
    if len(neg) > 1:
        raise ValueError("only one -1 is allowed in the target shape")
    known = 1
    for i, d in enumerate(tgt):
        if i not in neg:
            known *= d
    if neg:
        if known == 0 or total % known != 0:
            raise ValueError(f"cannot reshape {total} elements into {tuple(target_shape)}")
        tgt[neg[0]] = total // known
    elif known != total:
        raise ValueError(f"cannot reshape {total} elements into {tuple(target_shape)}")
    return tuple(tgt)


def pallas_reshape(x, target_shape):
    """Reproduce torch.reshape(x, target_shape) via a Pallas copy kernel."""
    total = int(x.size)
    tgt = _resolve_shape(total, target_shape)
    if total == 0:
        return jnp.reshape(x, tgt)

    itemsize = jnp.dtype(x.dtype).itemsize
    flat = jnp.reshape(x, (-1,))

    # Common case: element count is a multiple of 128 -> no padding copies.
    # Ragged case (rare): pad by < 128 elements only.
    # TODO(synk): handle the ragged tail with an in-kernel masked store instead
    # of a small wrapper-side pad/slice.
    pad = (-total) % 128
    if pad:
        flat = jnp.pad(flat, (0, pad))
    padded_total = total + pad

    # Lane-dense width: largest power-of-two multiple of 128 dividing the
    # stream, capped at 8192 lanes.
    W = 128
    while W * 2 <= 8192 and padded_total % (W * 2) == 0:
        W *= 2
    rows = padded_total // W

    # Row tile: target ~2 MiB per block, dtype-aware sublane multiple.
    sub = max(8, 32 // itemsize)          # 8 f32, 16 bf16, 32 int8/fp8
    target_bytes = 2 * 1024 * 1024
    rows_tile = max(1, target_bytes // (W * itemsize))
    rows_tile = max(sub, (rows_tile // sub) * sub)
    if rows_tile >= rows:
        rows_tile = rows                  # single block == full array dims (allowed)

    x2d = flat.reshape(rows, W)
    grid = (pl.cdiv(rows, rows_tile),)    # partial last block masked by Pallas

    out2d = pl.pallas_call(
        _copy_kernel,
        out_shape=jax.ShapeDtypeStruct((rows, W), x2d.dtype),
        grid_spec=pltpu.PrefetchScalarGridSpec(
            num_scalar_prefetch=0,
            grid=grid,
            in_specs=[pl.BlockSpec((rows_tile, W), lambda i: (i, 0))],
            out_specs=pl.BlockSpec((rows_tile, W), lambda i: (i, 0)),
        ),
        compiler_params=pltpu.CompilerParams(
            dimension_semantics=("parallel",),
            vmem_limit_bytes=32 * 1024 * 1024,
        ),
    )(x2d)

    out_flat = out2d.reshape(-1)
    if pad:
        out_flat = out_flat[:total]
    return out_flat.reshape(tgt)


class Reshape:
    """JAX/Pallas mirror of the PyTorch Reshape module."""

    def __init__(self, *args):
        self.shape = args

    def __call__(self, x):
        return pallas_reshape(x, self.shape)


if __name__ == "__main__":
    key = jax.random.PRNGKey(0)
    # Small NCHW input consistent with a typical conv feature map.
    x = jax.random.normal(key, (2, 4, 16, 16), dtype=jnp.float32)  # 2048 elements

    # Reshape(2, 64, 16): flatten channel+height into one axis.
    module = Reshape(2, 64, 16)
    out = jax.block_until_ready(module(x))
    ref = jnp.reshape(x, (2, 64, 16))
    assert out.shape == (2, 64, 16)
    assert out.dtype == x.dtype
    assert bool(jnp.array_equal(out, ref))

    # -1 inference path (2*4*16*16 = 2048 elements -> (2, 1024)).
    out2 = jax.block_until_ready(Reshape(2, -1)(x))
    assert out2.shape == (2, 1024)
    assert bool(jnp.array_equal(out2, jnp.reshape(x, (2, -1))))

    # Full flatten.
    out3 = jax.block_until_ready(Reshape(-1)(x))
    assert out3.shape == (2048,)
    assert bool(jnp.array_equal(out3, jnp.reshape(x, (-1,))))

    # Ragged (non multiple of 128) element count + bf16 dtype path.
    y = jax.random.normal(jax.random.PRNGKey(0), (3, 5, 7), dtype=jnp.bfloat16)  # 105 elems
    out4 = jax.block_until_ready(Reshape(5, -1)(y))
    assert out4.shape == (5, 21)
    assert out4.dtype == y.dtype
    assert bool(jnp.array_equal(out4, jnp.reshape(y, (5, 21))))

    print("KERNEL_OK")
</pallas_src>

<mosaic_0001>
module attributes {stable_mosaic.version = 11 : i64} {
  func.func @_copy_kernel(%arg0: i32, %arg1: memref<1x2048xf32, #tpu.memory_space<vmem>>, %arg2: memref<1x2048xf32, #tpu.memory_space<vmem>>) attributes {dimension_semantics = [#tpu.dimension_semantics<parallel>], iteration_bounds = array<i64: 1>, scalar_prefetch = 0 : i64, scratch_operands = 0 : i64, tpu.core_type = #tpu.core_type<tc>, window_params = [{transform_indices = @transform_0, window_bounds = array<i64: 1, 2048>}, {transform_indices = @transform_1, window_bounds = array<i64: 1, 2048>}]} {
    %c0 = arith.constant 0 : index
    %c0_0 = arith.constant 0 : index
    %0 = vector.load %arg1[%c0, %c0_0] : memref<1x2048xf32, #tpu.memory_space<vmem>>, vector<1x2048xf32>
    %c0_1 = arith.constant 0 : index
    %c0_2 = arith.constant 0 : index
    %1 = vector.load %arg2[%c0_1, %c0_2] : memref<1x2048xf32, #tpu.memory_space<vmem>>, vector<1x2048xf32>
    tpu.vector_store %arg2[%c0_1, %c0_2], %0 {strides = array<i32>} : memref<1x2048xf32, #tpu.memory_space<vmem>>, vector<1x2048xf32>,
    return
  }
  func.func @transform_0(%arg0: i32) -> (i32, i32) {
    %c0_i32 = arith.constant 0 : i32
    %c0_i32_0 = arith.constant 0 : i32
    return %arg0, %c0_i32 : i32, i32
  }
  func.func @transform_1(%arg0: i32) -> (i32, i32) {
    %c0_i32 = arith.constant 0 : i32
    %c0_i32_0 = arith.constant 0 : i32
    return %arg0, %c0_i32 : i32, i32
  }
}

</mosaic_0001>

<bundles_post_ra>
// kernel: tpu_custom_call.1
= control target key start
LH: loop header
LB: loop body
LE: loop exit
PB: predicated region body
PF: predicated region fallthrough
CT: control target
= control target key end

     0   :  { %6 = vsyncpa [#allocation3], 0  ;;  %s126_s0 = inlined_call_operand.hbm [shape: f32[1,2048], index: 0, kind: input, shape index: {}]   ;;  %s127_s1 = inlined_call_operand.hbm [shape: f32[1,2048], index: 1, kind: output, shape index: {}]  }
   0x1   :  { %7 = vsyncpa [#allocation4], 0  ;;  %s90_s6 = smov [#allocation2]   ;;  %s42_s10 = scalar_lea.hbm %s126_s0, 256 }
   0x2   :  { %s14_s7 = sshll.u32 %s90_s6, 4  ;;  %p43_p0 = scmp.ne.s32.totalorder %s126_s0, %s42_s10  ;;  %s15_s7 = int_to_ptr.vmem [resolvable:$true] %s14_s7 }
   0x3   :  { %p46_p1 = scmp.lt.u32.totalorder %s42_s10, %s126_s0 }
   0x5   :  { %p48_p2 = pnand %p46_p1, %p43_p0 }
   0x7   :  { %51 = shalt.err (!%p48_p2)
}
   0x8   :  { %s52_s15 = scalar_lea.vmem %s15_s7, 256  ;;  %p57_p4 = scmp.lt.s32.totalorder %s15_s7, %s15_s7 }
   0x9   :  { %p53_p3 = scmp.ne.s32.totalorder %s15_s7, %s52_s15  ;;  %p58_p5 = scmp.lt.s32.totalorder %s52_s15, %s52_s15 }
   0xb   :  { %p59_p6 = por %p58_p5, %p57_p4 }
   0xd   :  { %p60_p7 = pnand %p59_p6, %p53_p3 }
   0xf   :  { %63 = shalt.err (!%p60_p7)
}
  0x10   :  { %17 = dma.hbm_to_vmem [thread:$0]  %s126_s0, 256, %s15_s7, [#allocation3]  }
  0x11   :  { %86 = dma.done.wait [#allocation3], 256  }
  0x12   :  { %87 = vsyncadd [#allocation3], 4294967040  ;;  %s91_s18 = smov [#allocation5]   ;;  %v21_v0 = vld [vmem:[#allocation2] sm:$0xff]  ;;  %v22_v1 = vld [vmem:[#allocation2 + $0x8] sm:$0xff] }
  0x13   :  { %s31_s19 = sshll.u32 %s91_s18, 4  ;;  %23 = vst [vmem:[#allocation5] sm:$0xff] %v21_v0  ;;  %24 = vst [vmem:[#allocation5 + $0x8] sm:$0xff] %v22_v1  ;;  %s32_s19 = int_to_ptr.vmem [resolvable:$true] %s31_s19 }
  0x14   :  { %s64_s20 = scalar_lea.vmem %s32_s19, 256  ;;  %p69_p9 = scmp.lt.s32.totalorder %s32_s19, %s32_s19 }
  0x15   :  { %p65_p8 = scmp.ne.s32.totalorder %s32_s19, %s64_s20  ;;  %p70_p10 = scmp.lt.s32.totalorder %s64_s20, %s64_s20 }
  0x17   :  { %p71_p11 = por %p70_p10, %p69_p9 }
  0x19   :  { %p72_p12 = pnand %p71_p11, %p65_p8 }
  0x1b   :  { %75 = shalt.err (!%p72_p12)
}
  0x1c   :  { %s76_s0 = scalar_lea.hbm %s127_s1, 256 }
  0x1d   :  { %p77_p13 = scmp.ne.s32.totalorder %s127_s1, %s76_s0  ;;  %p80_p0 = scmp.lt.u32.totalorder %s76_s0, %s127_s1 }
  0x1f   :  { %p82_p1 = pnand %p80_p0, %p77_p13 }
  0x21   :  { %85 = shalt.err (!%p82_p1)
}
  0x22   :  { %34 = dma.vmem_to_hbm [thread:$0]  %s32_s19, 256, %s127_s1, [#allocation4]  }
  0x23   :  { %88 = dma.done.wait [#allocation4], 256  }
  0x24   :  { %89 = vsyncadd [#allocation4], 4294967040 }
  0x25   :  { %38 = vsyncpa [#allocation3], 1 }
  0x26   :  { %39 = vsyncpa [#allocation4], 1 }

</bundles_post_ra>
